<compile_context>
chip_gen: v6e
topology: v6e:2x2x1
jax: 0.10.0
libtpu: 0.0.40
codegen_flags: <defaults>
</compile_context>

<pallas_src>
import jax
import jax.numpy as jnp
from jax.experimental import pallas as pl
from jax.experimental.pallas import tpu as pltpu

HIDDEN_SIZE = 50
INPUT_SIZE = 1


def lstm_fc_kernel(x_ref, consts_ref, whh_ref, fcw_ref, fcb_ref, out_ref):
    """Fused LSTM recurrence + final Linear.

    x_ref      : (T, B, 1)  VMEM  inputs, time-major
    consts_ref : (5, 4*G)   VMEM  rows = [w_ih row, b_ih + b_hh,
                                          act. input scale, act. output scale,
                                          act. output offset]
    whh_ref    : (G, 4*G)   VMEM  stacked hidden->gate weights (i, f, g, o)
    fcw_ref    : (1, G)     VMEM  final linear weight row
    fcb_ref    : (1, 1)     SMEM  final linear bias (scalar)
    out_ref    : (B, 1)     VMEM  fc(h_T)
    """
    T = x_ref.shape[0]
    G = whh_ref.shape[0]

    # Hoist all loop-invariant loads out of the serial recurrence.
    consts = consts_ref[...]
    wih = consts[0:1, :]      # (1, 4G)  input->gate weights (input_size == 1)
    bias = consts[1:2, :]     # (1, 4G)  b_ih + b_hh
    s_in = consts[2:3, :]     # activation input scale  (0.5 sigmoid / 1 tanh)
    s_out = consts[3:4, :]    # activation output scale (0.5 sigmoid / 1 tanh)
    o_out = consts[4:5, :]    # activation output offset (0.5 sigmoid / 0 tanh)
    whh = whh_ref[...]        # (G, 4G)

    def activate(gates):
        # One EUP tanh for all four gates: sigmoid lanes use
        # sigmoid(x) = 0.5 * (tanh(x / 2) + 1); the g-gate lanes use plain tanh.
        return jnp.tanh(gates * s_in) * s_out + o_out

    def split(act):
        return (act[:, 0 * G:1 * G], act[:, 1 * G:2 * G],
                act[:, 2 * G:3 * G], act[:, 3 * G:4 * G])

    # t = 0 : h == c == 0  ->  no hidden matmul and no forget-gate term.
    act = activate(x_ref[0] * wih + bias)
    i_g, _, g_g, o_g = split(act)
    c = i_g * g_g
    h = o_g * jnp.tanh(c)

    # Fully unrolled recurrence (T is a small static trip count): one stacked
    # (B, G) @ (G, 4G) MXU matmul per step; the in-kernel input projection has
    # no dependence on h, so it overlaps the matmul.
    for t in range(1, T):
        gates = (x_ref[t] * wih + bias
                 + jnp.dot(h, whh, preferred_element_type=jnp.float32))
        act = activate(gates)
        i_g, f_g, g_g, o_g = split(act)
        c = f_g * c + i_g * g_g
        h = o_g * jnp.tanh(c)

    # fc(h_T): VPU multiply + XLU cross-lane reduction (cheaper than a
    # 1-column MXU pass at this size); padded fc weight lanes are zero.
    out_ref[...] = (jnp.sum(h * fcw_ref[...], axis=-1, keepdims=True)
                    + fcb_ref[0, 0])


def _pad_hidden(h):
    return ((h + 63) // 64) * 64


def init_params(key, input_size, hidden_size):
    """Deterministic parameter init matching nn.LSTM / nn.Linear shapes."""
    ks = jax.random.split(key, 6)
    H, I = hidden_size, input_size
    bound = 1.0 / jnp.sqrt(jnp.float32(H))
    u = lambda k, shape: jax.random.uniform(k, shape, jnp.float32, -bound, bound)
    return {
        "weight_ih": u(ks[0], (4 * H, I)),   # PyTorch layout (4H, I), order i,f,g,o
        "weight_hh": u(ks[1], (4 * H, H)),   # (4H, H)
        "bias_ih": u(ks[2], (4 * H,)),
        "bias_hh": u(ks[3], (4 * H,)),
        "fc_weight": u(ks[4], (1, H)),       # nn.Linear(H, 1)
        "fc_bias": u(ks[5], (1,)),
    }


def lstm_model_forward(x, params):
    """x: (B, T, 1) float32 -> (B, 1) float32 (matches LSTMModel.forward)."""
    B, T, I = x.shape
    assert I == 1, "kernel specialized for input_size == 1 (module spec)"
    H = params["weight_hh"].shape[1]
    G = _pad_hidden(H)                                   # 50 -> 64
    f32 = jnp.float32

    w_ih = params["weight_ih"].astype(f32)               # (4H, 1)
    w_hh = params["weight_hh"].astype(f32)               # (4H, H)
    bias = (params["bias_ih"] + params["bias_hh"]).astype(f32)   # (4H,)

    # Stack the 4 gates along the lane axis with zero padding so each gate
    # occupies a G-wide slice of a 4*G(=256)-wide tensor.  Padded weight
    # rows/cols and biases are zero, so padded hidden lanes stay 0 forever.
    wih_row = jnp.zeros((4 * G,), f32)
    b_row = jnp.zeros((4 * G,), f32)
    whh_p = jnp.zeros((G, 4 * G), f32)
    for g in range(4):
        wih_row = wih_row.at[g * G:g * G + H].set(w_ih[g * H:(g + 1) * H, 0])
        b_row = b_row.at[g * G:g * G + H].set(bias[g * H:(g + 1) * H])
        whh_p = whh_p.at[:H, g * G:g * G + H].set(w_hh[g * H:(g + 1) * H, :].T)

    # Per-lane constants for the single-tanh activation trick: the g-gate
    # lanes (2G:3G) use plain tanh, the i/f/o lanes use
    # sigmoid(x) = 0.5 * (tanh(x / 2) + 1).
    is_tanh = jnp.zeros((4 * G,), f32).at[2 * G:3 * G].set(1.0)
    s_in = jnp.where(is_tanh == 1.0, 1.0, 0.5)
    s_out = jnp.where(is_tanh == 1.0, 1.0, 0.5)
    o_out = jnp.where(is_tanh == 1.0, 0.0, 0.5)

    consts = jnp.stack([wih_row, b_row, s_in, s_out, o_out], axis=0)  # (5, 4G)

    fcw = jnp.zeros((1, G), f32).at[0, :H].set(params["fc_weight"][0].astype(f32))
    fcb = params["fc_bias"].reshape(1, 1).astype(f32)

    x_t = jnp.transpose(x, (1, 0, 2)).astype(f32)        # (T, B, 1), tiny copy

    vmem = pl.BlockSpec(memory_space=pltpu.MemorySpace.VMEM)
    smem = pl.BlockSpec(memory_space=pltpu.MemorySpace.SMEM)
    return pl.pallas_call(
        lstm_fc_kernel,
        out_shape=jax.ShapeDtypeStruct((B, 1), jnp.float32),
        in_specs=[vmem, vmem, vmem, vmem, smem],
        out_specs=vmem,
    )(x_t, consts, whh_p, fcw, fcb)


def reference_forward(x, params):
    """Pure-JAX reference implementing the same PyTorch LSTM semantics."""
    B, T, I = x.shape
    H = params["weight_hh"].shape[1]
    w_ih = params["weight_ih"]
    w_hh = params["weight_hh"]
    b = params["bias_ih"] + params["bias_hh"]
    h = jnp.zeros((B, H), jnp.float32)
    c = jnp.zeros((B, H), jnp.float32)
    for t in range(T):
        gates = x[:, t, :] @ w_ih.T + h @ w_hh.T + b     # (B, 4H)
        i_g = jax.nn.sigmoid(gates[:, 0:H])
        f_g = jax.nn.sigmoid(gates[:, H:2 * H])
        g_g = jnp.tanh(gates[:, 2 * H:3 * H])
        o_g = jax.nn.sigmoid(gates[:, 3 * H:4 * H])
        c = f_g * c + i_g * g_g
        h = o_g * jnp.tanh(c)
    return h @ params["fc_weight"].T + params["fc_bias"]


if __name__ == "__main__":
    key = jax.random.PRNGKey(0)
    pkey, xkey = jax.random.split(key)

    B, T = 2, 8
    params = init_params(pkey, INPUT_SIZE, HIDDEN_SIZE)
    x = jax.random.normal(xkey, (B, T, INPUT_SIZE), jnp.float32)

    out = jax.jit(lstm_model_forward)(x, params)
    out = jax.block_until_ready(out)

    ref = reference_forward(x, params)
    assert out.shape == (B, 1)
    # 1e-4 tolerance: kernel computes sigmoid as 0.5*(tanh(x/2)+1) (single EUP
    # push per step), which differs from XLA's logistic by a few f32 ulps.
    assert jnp.allclose(out, ref, atol=1e-4, rtol=1e-4), (out, ref)

    print("KERNEL_OK")
</pallas_src>

<mosaic_0001>
module attributes {stable_mosaic.version = 11 : i64} {
  func.func @lstm_fc_kernel(%arg0: memref<8x2x1xf32, #tpu.memory_space<vmem>>, %arg1: memref<5x256xf32, #tpu.memory_space<vmem>>, %arg2: memref<64x256xf32, #tpu.memory_space<vmem>>, %arg3: memref<1x64xf32, #tpu.memory_space<vmem>>, %arg4: memref<1x1xf32, #tpu.memory_space<smem>>, %arg5: memref<2x1xf32, #tpu.memory_space<vmem>>) attributes {dimension_semantics = [], scalar_prefetch = 0 : i64, scratch_operands = 0 : i64, tpu.core_type = #tpu.core_type<tc>} {
    %c0 = arith.constant 0 : index
    %c0_0 = arith.constant 0 : index
    %0 = vector.load %arg1[%c0, %c0_0] : memref<5x256xf32, #tpu.memory_space<vmem>>, vector<5x256xf32>
    %1 = vector.extract_strided_slice %0 {offsets = [0, 0], sizes = [1, 256], strides = [1, 1]} : vector<5x256xf32> to vector<1x256xf32>
    %2 = vector.extract_strided_slice %0 {offsets = [1, 0], sizes = [1, 256], strides = [1, 1]} : vector<5x256xf32> to vector<1x256xf32>
    %3 = vector.extract_strided_slice %0 {offsets = [2, 0], sizes = [1, 256], strides = [1, 1]} : vector<5x256xf32> to vector<1x256xf32>
    %4 = vector.extract_strided_slice %0 {offsets = [3, 0], sizes = [1, 256], strides = [1, 1]} : vector<5x256xf32> to vector<1x256xf32>
    %5 = vector.extract_strided_slice %0 {offsets = [4, 0], sizes = [1, 256], strides = [1, 1]} : vector<5x256xf32> to vector<1x256xf32>
    %c0_1 = arith.constant 0 : index
    %c0_2 = arith.constant 0 : index
    %6 = vector.load %arg2[%c0_1, %c0_2] : memref<64x256xf32, #tpu.memory_space<vmem>>, vector<64x256xf32>
    %c0_3 = arith.constant 0 : index
    %c0_4 = arith.constant 0 : index
    %c0_5 = arith.constant 0 : index
    %7 = vector.load %arg0[%c0_3, %c0_4, %c0_5] : memref<8x2x1xf32, #tpu.memory_space<vmem>>, vector<1x2x1xf32>
    %8 = vector.shape_cast %7 : vector<1x2x1xf32> to vector<2x1xf32>
    %9 = vector.broadcast %8 : vector<2x1xf32> to vector<2x256xf32>
    %10 = vector.broadcast %1 : vector<1x256xf32> to vector<2x256xf32>
    %11 = arith.mulf %9, %10 : vector<2x256xf32>
    %12 = vector.broadcast %2 : vector<1x256xf32> to vector<2x256xf32>
    %13 = arith.addf %11, %12 : vector<2x256xf32>
    %14 = vector.broadcast %3 : vector<1x256xf32> to vector<2x256xf32>
    %15 = arith.mulf %13, %14 : vector<2x256xf32>
    %16 = math.tanh %15 : vector<2x256xf32>
    %17 = vector.broadcast %4 : vector<1x256xf32> to vector<2x256xf32>
    %18 = arith.mulf %16, %17 : vector<2x256xf32>
    %19 = vector.broadcast %5 : vector<1x256xf32> to vector<2x256xf32>
    %20 = arith.addf %18, %19 : vector<2x256xf32>
    %21 = vector.extract_strided_slice %20 {offsets = [0, 0], sizes = [2, 64], strides = [1, 1]} : vector<2x256xf32> to vector<2x64xf32>
    %22 = vector.extract_strided_slice %20 {offsets = [0, 128], sizes = [2, 64], strides = [1, 1]} : vector<2x256xf32> to vector<2x64xf32>
    %23 = vector.extract_strided_slice %20 {offsets = [0, 192], sizes = [2, 64], strides = [1, 1]} : vector<2x256xf32> to vector<2x64xf32>
    %24 = arith.mulf %21, %22 : vector<2x64xf32>
    %25 = math.tanh %24 : vector<2x64xf32>
    %26 = arith.mulf %23, %25 : vector<2x64xf32>
    %c1 = arith.constant 1 : index
    %c0_6 = arith.constant 0 : index
    %c0_7 = arith.constant 0 : index
    %27 = vector.load %arg0[%c1, %c0_6, %c0_7] : memref<8x2x1xf32, #tpu.memory_space<vmem>>, vector<1x2x1xf32>
    %28 = vector.shape_cast %27 : vector<1x2x1xf32> to vector<2x1xf32>
    %29 = vector.broadcast %28 : vector<2x1xf32> to vector<2x256xf32>
    %30 = vector.broadcast %1 : vector<1x256xf32> to vector<2x256xf32>
    %31 = arith.mulf %29, %30 : vector<2x256xf32>
    %32 = vector.broadcast %2 : vector<1x256xf32> to vector<2x256xf32>
    %33 = arith.addf %31, %32 : vector<2x256xf32>
    %cst = arith.constant dense<0.000000e+00> : vector<2x256xf32>
    %34 = tpu.matmul %26, %6, %cst {dimension_numbers = #tpu.dot_dimension_numbers<[1], [0], [0], [1], [0, 0, 1, 1], [], []>} : vector<2x64xf32>, vector<64x256xf32>, vector<2x256xf32> -> vector<2x256xf32>
    %35 = arith.addf %33, %34 : vector<2x256xf32>
    %36 = vector.broadcast %3 : vector<1x256xf32> to vector<2x256xf32>
    %37 = arith.mulf %35, %36 : vector<2x256xf32>
    %38 = math.tanh %37 : vector<2x256xf32>
    %39 = vector.broadcast %4 : vector<1x256xf32> to vector<2x256xf32>
    %40 = arith.mulf %38, %39 : vector<2x256xf32>
    %41 = vector.broadcast %5 : vector<1x256xf32> to vector<2x256xf32>
    %42 = arith.addf %40, %41 : vector<2x256xf32>
    %43 = vector.extract_strided_slice %42 {offsets = [0, 0], sizes = [2, 64], strides = [1, 1]} : vector<2x256xf32> to vector<2x64xf32>
    %44 = vector.extract_strided_slice %42 {offsets = [0, 64], sizes = [2, 64], strides = [1, 1]} : vector<2x256xf32> to vector<2x64xf32>
    %45 = vector.extract_strided_slice %42 {offsets = [0, 128], sizes = [2, 64], strides = [1, 1]} : vector<2x256xf32> to vector<2x64xf32>
    %46 = vector.extract_strided_slice %42 {offsets = [0, 192], sizes = [2, 64], strides = [1, 1]} : vector<2x256xf32> to vector<2x64xf32>
    %47 = arith.mulf %44, %24 : vector<2x64xf32>
    %48 = arith.mulf %43, %45 : vector<2x64xf32>
    %49 = arith.addf %47, %48 : vector<2x64xf32>
    %50 = math.tanh %49 : vector<2x64xf32>
    %51 = arith.mulf %46, %50 : vector<2x64xf32>
    %c2 = arith.constant 2 : index
    %c0_8 = arith.constant 0 : index
    %c0_9 = arith.constant 0 : index
    %52 = vector.load %arg0[%c2, %c0_8, %c0_9] : memref<8x2x1xf32, #tpu.memory_space<vmem>>, vector<1x2x1xf32>
    %53 = vector.shape_cast %52 : vector<1x2x1xf32> to vector<2x1xf32>
    %54 = vector.broadcast %53 : vector<2x1xf32> to vector<2x256xf32>
    %55 = vector.broadcast %1 : vector<1x256xf32> to vector<2x256xf32>
    %56 = arith.mulf %54, %55 : vector<2x256xf32>
    %57 = vector.broadcast %2 : vector<1x256xf32> to vector<2x256xf32>
    %58 = arith.addf %56, %57 : vector<2x256xf32>
    %cst_10 = arith.constant dense<0.000000e+00> : vector<2x256xf32>
    %59 = tpu.matmul %51, %6, %cst_10 {dimension_numbers = #tpu.dot_dimension_numbers<[1], [0], [0], [1], [0, 0, 1, 1], [], []>} : vector<2x64xf32>, vector<64x256xf32>, vector<2x256xf32> -> vector<2x256xf32>
    %60 = arith.addf %58, %59 : vector<2x256xf32>
    %61 = vector.broadcast %3 : vector<1x256xf32> to vector<2x256xf32>
    %62 = arith.mulf %60, %61 : vector<2x256xf32>
    %63 = math.tanh %62 : vector<2x256xf32>
    %64 = vector.broadcast %4 : vector<1x256xf32> to vector<2x256xf32>
    %65 = arith.mulf %63, %64 : vector<2x256xf32>
    %66 = vector.broadcast %5 : vector<1x256xf32> to vector<2x256xf32>
    %67 = arith.addf %65, %66 : vector<2x256xf32>
    %68 = vector.extract_strided_slice %67 {offsets = [0, 0], sizes = [2, 64], strides = [1, 1]} : vector<2x256xf32> to vector<2x64xf32>
    %69 = vector.extract_strided_slice %67 {offsets = [0, 64], sizes = [2, 64], strides = [1, 1]} : vector<2x256xf32> to vector<2x64xf32>
    %70 = vector.extract_strided_slice %67 {offsets = [0, 128], sizes = [2, 64], strides = [1, 1]} : vector<2x256xf32> to vector<2x64xf32>
    %71 = vector.extract_strided_slice %67 {offsets = [0, 192], sizes = [2, 64], strides = [1, 1]} : vector<2x256xf32> to vector<2x64xf32>
    %72 = arith.mulf %69, %49 : vector<2x64xf32>
    %73 = arith.mulf %68, %70 : vector<2x64xf32>
    %74 = arith.addf %72, %73 : vector<2x64xf32>
    %75 = math.tanh %74 : vector<2x64xf32>
    %76 = arith.mulf %71, %75 : vector<2x64xf32>
    %c3 = arith.constant 3 : index
    %c0_11 = arith.constant 0 : index
    %c0_12 = arith.constant 0 : index
    %77 = vector.load %arg0[%c3, %c0_11, %c0_12] : memref<8x2x1xf32, #tpu.memory_space<vmem>>, vector<1x2x1xf32>
    %78 = vector.shape_cast %77 : vector<1x2x1xf32> to vector<2x1xf32>
    %79 = vector.broadcast %78 : vector<2x1xf32> to vector<2x256xf32>
    %80 = vector.broadcast %1 : vector<1x256xf32> to vector<2x256xf32>
    %81 = arith.mulf %79, %80 : vector<2x256xf32>
    %82 = vector.broadcast %2 : vector<1x256xf32> to vector<2x256xf32>
    %83 = arith.addf %81, %82 : vector<2x256xf32>
    %cst_13 = arith.constant dense<0.000000e+00> : vector<2x256xf32>
    %84 = tpu.matmul %76, %6, %cst_13 {dimension_numbers = #tpu.dot_dimension_numbers<[1], [0], [0], [1], [0, 0, 1, 1], [], []>} : vector<2x64xf32>, vector<64x256xf32>, vector<2x256xf32> -> vector<2x256xf32>
    %85 = arith.addf %83, %84 : vector<2x256xf32>
    %86 = vector.broadcast %3 : vector<1x256xf32> to vector<2x256xf32>
    %87 = arith.mulf %85, %86 : vector<2x256xf32>
    %88 = math.tanh %87 : vector<2x256xf32>
    %89 = vector.broadcast %4 : vector<1x256xf32> to vector<2x256xf32>
    %90 = arith.mulf %88, %89 : vector<2x256xf32>
    %91 = vector.broadcast %5 : vector<1x256xf32> to vector<2x256xf32>
    %92 = arith.addf %90, %91 : vector<2x256xf32>
    %93 = vector.extract_strided_slice %92 {offsets = [0, 0], sizes = [2, 64], strides = [1, 1]} : vector<2x256xf32> to vector<2x64xf32>
    %94 = vector.extract_strided_slice %92 {offsets = [0, 64], sizes = [2, 64], strides = [1, 1]} : vector<2x256xf32> to vector<2x64xf32>
    %95 = vector.extract_strided_slice %92 {offsets = [0, 128], sizes = [2, 64], strides = [1, 1]} : vector<2x256xf32> to vector<2x64xf32>
    %96 = vector.extract_strided_slice %92 {offsets = [0, 192], sizes = [2, 64], strides = [1, 1]} : vector<2x256xf32> to vector<2x64xf32>
    %97 = arith.mulf %94, %74 : vector<2x64xf32>
    %98 = arith.mulf %93, %95 : vector<2x64xf32>
    %99 = arith.addf %97, %98 : vector<2x64xf32>
    %100 = math.tanh %99 : vector<2x64xf32>
    %101 = arith.mulf %96, %100 : vector<2x64xf32>
    %c4 = arith.constant 4 : index
    %c0_14 = arith.constant 0 : index
    %c0_15 = arith.constant 0 : index
    %102 = vector.load %arg0[%c4, %c0_14, %c0_15] : memref<8x2x1xf32, #tpu.memory_space<vmem>>, vector<1x2x1xf32>
    %103 = vector.shape_cast %102 : vector<1x2x1xf32> to vector<2x1xf32>
    %104 = vector.broadcast %103 : vector<2x1xf32> to vector<2x256xf32>
    %105 = vector.broadcast %1 : vector<1x256xf32> to vector<2x256xf32>
    %106 = arith.mulf %104, %105 : vector<2x256xf32>
    %107 = vector.broadcast %2 : vector<1x256xf32> to vector<2x256xf32>
    %108 = arith.addf %106, %107 : vector<2x256xf32>
    %cst_16 = arith.constant dense<0.000000e+00> : vector<2x256xf32>
    %109 = tpu.matmul %101, %6, %cst_16 {dimension_numbers = #tpu.dot_dimension_numbers<[1], [0], [0], [1], [0, 0, 1, 1], [], []>} : vector<2x64xf32>, vector<64x256xf32>, vector<2x256xf32> -> vector<2x256xf32>
    %110 = arith.addf %108, %109 : vector<2x256xf32>
    %111 = vector.broadcast %3 : vector<1x256xf32> to vector<2x256xf32>
    %112 = arith.mulf %110, %111 : vector<2x256xf32>
    %113 = math.tanh %112 : vector<2x256xf32>
    %114 = vector.broadcast %4 : vector<1x256xf32> to vector<2x256xf32>
    %115 = arith.mulf %113, %114 : vector<2x256xf32>
    %116 = vector.broadcast %5 : vector<1x256xf32> to vector<2x256xf32>
    %117 = arith.addf %115, %116 : vector<2x256xf32>
    %118 = vector.extract_strided_slice %117 {offsets = [0, 0], sizes = [2, 64], strides = [1, 1]} : vector<2x256xf32> to vector<2x64xf32>
    %119 = vector.extract_strided_slice %117 {offsets = [0, 64], sizes = [2, 64], strides = [1, 1]} : vector<2x256xf32> to vector<2x64xf32>
    %120 = vector.extract_strided_slice %117 {offsets = [0, 128], sizes = [2, 64], strides = [1, 1]} : vector<2x256xf32> to vector<2x64xf32>
    %121 = vector.extract_strided_slice %117 {offsets = [0, 192], sizes = [2, 64], strides = [1, 1]} : vector<2x256xf32> to vector<2x64xf32>
    %122 = arith.mulf %119, %99 : vector<2x64xf32>
    %123 = arith.mulf %118, %120 : vector<2x64xf32>
    %124 = arith.addf %122, %123 : vector<2x64xf32>
    %125 = math.tanh %124 : vector<2x64xf32>
    %126 = arith.mulf %121, %125 : vector<2x64xf32>
    %c5 = arith.constant 5 : index
    %c0_17 = arith.constant 0 : index
    %c0_18 = arith.constant 0 : index
    %127 = vector.load %arg0[%c5, %c0_17, %c0_18] : memref<8x2x1xf32, #tpu.memory_space<vmem>>, vector<1x2x1xf32>
    %128 = vector.shape_cast %127 : vector<1x2x1xf32> to vector<2x1xf32>
    %129 = vector.broadcast %128 : vector<2x1xf32> to vector<2x256xf32>
    %130 = vector.broadcast %1 : vector<1x256xf32> to vector<2x256xf32>
    %131 = arith.mulf %129, %130 : vector<2x256xf32>
    %132 = vector.broadcast %2 : vector<1x256xf32> to vector<2x256xf32>
    %133 = arith.addf %131, %132 : vector<2x256xf32>
    %cst_19 = arith.constant dense<0.000000e+00> : vector<2x256xf32>
    %134 = tpu.matmul %126, %6, %cst_19 {dimension_numbers = #tpu.dot_dimension_numbers<[1], [0], [0], [1], [0, 0, 1, 1], [], []>} : vector<2x64xf32>, vector<64x256xf32>, vector<2x256xf32> -> vector<2x256xf32>
    %135 = arith.addf %133, %134 : vector<2x256xf32>
    %136 = vector.broadcast %3 : vector<1x256xf32> to vector<2x256xf32>
    %137 = arith.mulf %135, %136 : vector<2x256xf32>
    %138 = math.tanh %137 : vector<2x256xf32>
    %139 = vector.broadcast %4 : vector<1x256xf32> to vector<2x256xf32>
    %140 = arith.mulf %138, %139 : vector<2x256xf32>
    %141 = vector.broadcast %5 : vector<1x256xf32> to vector<2x256xf32>
    %142 = arith.addf %140, %141 : vector<2x256xf32>
    %143 = vector.extract_strided_slice %142 {offsets = [0, 0], sizes = [2, 64], strides = [1, 1]} : vector<2x256xf32> to vector<2x64xf32>
    %144 = vector.extract_strided_slice %142 {offsets = [0, 64], sizes = [2, 64], strides = [1, 1]} : vector<2x256xf32> to vector<2x64xf32>
    %145 = vector.extract_strided_slice %142 {offsets = [0, 128], sizes = [2, 64], strides = [1, 1]} : vector<2x256xf32> to vector<2x64xf32>
    %146 = vector.extract_strided_slice %142 {offsets = [0, 192], sizes = [2, 64], strides = [1, 1]} : vector<2x256xf32> to vector<2x64xf32>
    %147 = arith.mulf %144, %124 : vector<2x64xf32>
    %148 = arith.mulf %143, %145 : vector<2x64xf32>
    %149 = arith.addf %147, %148 : vector<2x64xf32>
    %150 = math.tanh %149 : vector<2x64xf32>
    %151 = arith.mulf %146, %150 : vector<2x64xf32>
    %c6 = arith.constant 6 : index
    %c0_20 = arith.constant 0 : index
    %c0_21 = arith.constant 0 : index
    %152 = vector.load %arg0[%c6, %c0_20, %c0_21] : memref<8x2x1xf32, #tpu.memory_space<vmem>>, vector<1x2x1xf32>
    %153 = vector.shape_cast %152 : vector<1x2x1xf32> to vector<2x1xf32>
    %154 = vector.broadcast %153 : vector<2x1xf32> to vector<2x256xf32>
    %155 = vector.broadcast %1 : vector<1x256xf32> to vector<2x256xf32>
    %156 = arith.mulf %154, %155 : vector<2x256xf32>
    %157 = vector.broadcast %2 : vector<1x256xf32> to vector<2x256xf32>
    %158 = arith.addf %156, %157 : vector<2x256xf32>
    %cst_22 = arith.constant dense<0.000000e+00> : vector<2x256xf32>
    %159 = tpu.matmul %151, %6, %cst_22 {dimension_numbers = #tpu.dot_dimension_numbers<[1], [0], [0], [1], [0, 0, 1, 1], [], []>} : vector<2x64xf32>, vector<64x256xf32>, vector<2x256xf32> -> vector<2x256xf32>
    %160 = arith.addf %158, %159 : vector<2x256xf32>
    %161 = vector.broadcast %3 : vector<1x256xf32> to vector<2x256xf32>
    %162 = arith.mulf %160, %161 : vector<2x256xf32>
    %163 = math.tanh %162 : vector<2x256xf32>
    %164 = vector.broadcast %4 : vector<1x256xf32> to vector<2x256xf32>
    %165 = arith.mulf %163, %164 : vector<2x256xf32>
    %166 = vector.broadcast %5 : vector<1x256xf32> to vector<2x256xf32>
    %167 = arith.addf %165, %166 : vector<2x256xf32>
    %168 = vector.extract_strided_slice %167 {offsets = [0, 0], sizes = [2, 64], strides = [1, 1]} : vector<2x256xf32> to vector<2x64xf32>
    %169 = vector.extract_strided_slice %167 {offsets = [0, 64], sizes = [2, 64], strides = [1, 1]} : vector<2x256xf32> to vector<2x64xf32>
    %170 = vector.extract_strided_slice %167 {offsets = [0, 128], sizes = [2, 64], strides = [1, 1]} : vector<2x256xf32> to vector<2x64xf32>
    %171 = vector.extract_strided_slice %167 {offsets = [0, 192], sizes = [2, 64], strides = [1, 1]} : vector<2x256xf32> to vector<2x64xf32>
    %172 = arith.mulf %169, %149 : vector<2x64xf32>
    %173 = arith.mulf %168, %170 : vector<2x64xf32>
    %174 = arith.addf %172, %173 : vector<2x64xf32>
    %175 = math.tanh %174 : vector<2x64xf32>
    %176 = arith.mulf %171, %175 : vector<2x64xf32>
    %c7 = arith.constant 7 : index
    %c0_23 = arith.constant 0 : index
    %c0_24 = arith.constant 0 : index
    %177 = vector.load %arg0[%c7, %c0_23, %c0_24] : memref<8x2x1xf32, #tpu.memory_space<vmem>>, vector<1x2x1xf32>
    %178 = vector.shape_cast %177 : vector<1x2x1xf32> to vector<2x1xf32>
    %179 = vector.broadcast %178 : vector<2x1xf32> to vector<2x256xf32>
    %180 = vector.broadcast %1 : vector<1x256xf32> to vector<2x256xf32>
    %181 = arith.mulf %179, %180 : vector<2x256xf32>
    %182 = vector.broadcast %2 : vector<1x256xf32> to vector<2x256xf32>
    %183 = arith.addf %181, %182 : vector<2x256xf32>
    %cst_25 = arith.constant dense<0.000000e+00> : vector<2x256xf32>
    %184 = tpu.matmul %176, %6, %cst_25 {dimension_numbers = #tpu.dot_dimension_numbers<[1], [0], [0], [1], [0, 0, 1, 1], [], []>} : vector<2x64xf32>, vector<64x256xf32>, vector<2x256xf32> -> vector<2x256xf32>
    %185 = arith.addf %183, %184 : vector<2x256xf32>
    %186 = vector.broadcast %3 : vector<1x256xf32> to vector<2x256xf32>
    %187 = arith.mulf %185, %186 : vector<2x256xf32>
    %188 = math.tanh %187 : vector<2x256xf32>
    %189 = vector.broadcast %4 : vector<1x256xf32> to vector<2x256xf32>
    %190 = arith.mulf %188, %189 : vector<2x256xf32>
    %191 = vector.broadcast %5 : vector<1x256xf32> to vector<2x256xf32>
    %192 = arith.addf %190, %191 : vector<2x256xf32>
    %193 = vector.extract_strided_slice %192 {offsets = [0, 0], sizes = [2, 64], strides = [1, 1]} : vector<2x256xf32> to vector<2x64xf32>
    %194 = vector.extract_strided_slice %192 {offsets = [0, 64], sizes = [2, 64], strides = [1, 1]} : vector<2x256xf32> to vector<2x64xf32>
    %195 = vector.extract_strided_slice %192 {offsets = [0, 128], sizes = [2, 64], strides = [1, 1]} : vector<2x256xf32> to vector<2x64xf32>
    %196 = vector.extract_strided_slice %192 {offsets = [0, 192], sizes = [2, 64], strides = [1, 1]} : vector<2x256xf32> to vector<2x64xf32>
    %197 = arith.mulf %194, %174 : vector<2x64xf32>
    %198 = arith.mulf %193, %195 : vector<2x64xf32>
    %199 = arith.addf %197, %198 : vector<2x64xf32>
    %200 = math.tanh %199 : vector<2x64xf32>
    %201 = arith.mulf %196, %200 : vector<2x64xf32>
    %c0_26 = arith.constant 0 : index
    %c0_27 = arith.constant 0 : index
    %202 = vector.load %arg3[%c0_26, %c0_27] : memref<1x64xf32, #tpu.memory_space<vmem>>, vector<1x64xf32>
    %203 = vector.broadcast %202 : vector<1x64xf32> to vector<2x64xf32>
    %204 = arith.mulf %201, %203 : vector<2x64xf32>
    %cst_28 = arith.constant dense<0.000000e+00> : vector<2xf32>
    %205 = vector.multi_reduction <add>, %204, %cst_28 [1] : vector<2x64xf32> to vector<2xf32>
    %206 = vector.shape_cast %205 : vector<2xf32> to vector<2x1xf32>
    %c0_29 = arith.constant 0 : index
    %c0_30 = arith.constant 0 : index
    %207 = memref.load %arg4[%c0_29, %c0_30] : memref<1x1xf32, #tpu.memory_space<smem>>
    %208 = vector.broadcast %207 : f32 to vector<2x1xf32>
    %209 = arith.addf %206, %208 : vector<2x1xf32>
    %c0_31 = arith.constant 0 : index
    %c0_32 = arith.constant 0 : index
    %210 = vector.load %arg5[%c0_31, %c0_32] : memref<2x1xf32, #tpu.memory_space<vmem>>, vector<2x1xf32>
    tpu.vector_store %arg5[%c0_31, %c0_32], %209 {strides = array<i32>} : memref<2x1xf32, #tpu.memory_space<vmem>>, vector<2x1xf32>,
    return
  }
}

</mosaic_0001>

<bundles_post_ra>
// kernel: lstm_model_forward.1
= control target key start
LH: loop header
LB: loop body
LE: loop exit
PB: predicated region body
PF: predicated region fallthrough
CT: control target
= control target key end

     0   :  { %v946_v0 = vmov 0   ;;  %v45_v2 = vlaneseq  ;;  %v947_v38 = vmov 0.0   ;;  %s948_s20 = smov 64   ;;  %vm118_vm0 = vcmask 523264   ;;  %s1342_s0 = inlined_call_operand.vmem [shape: f32[8,2,1], index: 0, kind: input, shape index: {}]   ;;  %s1343_s1 = inlined_call_operand.vmem [shape: f32[5,256], index: 1, kind: input, shape index: {}]   ;;  %s1344_s2 = inlined_call_operand.vmem [shape: f32[64,256], index: 2, kind: input, shape index: {}]   ;;  %s1345_s3 = inlined_call_operand.vmem [shape: f32[1,64], index: 3, kind: input, shape index: {}]   ;;  %s1346_s4 = inlined_call_operand.<no memory space> [shape: f32[1,1], index: 4, kind: input, shape index: {}]   ;;  %s1347_s5 = inlined_call_operand.vmem [shape: f32[2,1], index: 5, kind: output, shape index: {}]  }
   0x1   :  { %896 = vset.pattern.permute.xlu0 %v946_v0  ;;  %v39_v1 = vld [vmem:[%s1342_s0] sm:$0x3]  ;;  %897 = vset.pattern.permute.xlu1 %v946_v0  ;;  %v22_v6 = vld [vmem:[%s1343_s1 + $0x8] sm:$0x1f]  ;;  %v1021_v35 = vld [vmem:[%s1344_s2 + $0x78] sm:$0xff]  ;;  %vm865_vm1 = vcmask 517120  }
   0x2   :  { %42 = vperm.xlu0 %896, %v39_v1   ;;  %v46_v3 = vshrl.u32 %v45_v2, 7  ;;  %v21_v5 = vld [vmem:[%s1343_s1] sm:$0x1f]  ;;  %v1026_v36 = vld [vmem:[%s1344_s2 + $0x70] sm:$0xff]  ;;  %v1031_v37 = vld [vmem:[%s1344_s2 + $0x68] sm:$0xff]  ;;  %185 = vmatprep.mubr.f32.mxu0 %v947_v38  ;;  %vm872_vm2 = vcmask 1024  }
   0x3   :  { %295 = vmatprep.mubr.f32.mxu1 %v947_v38  ;;  %137 = vmatprep.subr.mxu0 %v1021_v35  ;;  %v1039_v39 = vld [vmem:[%s1344_s2 + $0x60] sm:$0xff]  ;;  %v1046_v40 = vld [vmem:[%s1344_s2 + $0x58] sm:$0xff]  ;;  %v1053_v41 = vld [vmem:[%s1344_s2 + $0x50] sm:$0xff] }
   0x4   :  { %v47_v4 = vsub.s32 0, %v46_v3  ;;  %v57_v7 = vsub.s32 1, %v46_v3  ;;  %v67_v10 = vsub.s32 2, %v46_v3  ;;  %v79_v22 = vsub.s32 3, %v46_v3  ;;  %247 = vmatprep.subr.mxu1 %v1021_v35  ;;  %138 = vmatpush1.msra.mxu0 %v1026_v36  ;;  %v1060_v42 = vld [vmem:[%s1344_s2 + $0x48] sm:$0xff]  ;;  %v1067_v43 = vld [vmem:[%s1344_s2 + $0x40] sm:$0xff] }
   0x5   :  { %v89_v23 = vsub.s32 4, %v46_v3  ;;  %248 = vmatpush1.msra.mxu1 %v1026_v36  ;;  %139 = vmatprep.subr.mxu0 %v1031_v37  ;;  %v1074_v44 = vld [vmem:[%s1344_s2 + $0x38] sm:$0xff]  ;;  %v1081_v45 = vld [vmem:[%s1344_s2 + $0x30] sm:$0xff]  ;;  %v1088_v47 = vld [vmem:[%s1344_s2 + $0x28] sm:$0xff] }
   0x6   :  { %v988_v8 = vrot.slane %v21_v5, %v47_v4  ;;  %v990_v9 = vrot.slane %v22_v6, %v47_v4  ;;  %v992_v11 = vrot.slane %v21_v5, %v57_v7  ;;  %v994_v12 = vrot.slane %v22_v6, %v57_v7  ;;  %249 = vmatprep.subr.mxu1 %v1031_v37  ;;  %v1096_v48 = vld [vmem:[%s1344_s2 + $0x20] sm:$0xff]  ;;  %v1102_v49 = vld [vmem:[%s1344_s2 + $0x18] sm:$0xff]  ;;  %v1109_v50 = vld [vmem:[%s1344_s2 + $0x10] sm:$0xff] }
   0x7   :  { %v996_v14 = vrot.slane %v21_v5, %v67_v10  ;;  %v998_v15 = vrot.slane %v22_v6, %v67_v10  ;;  %v1006_v24 = vrot.slane %v21_v5, %v79_v22  ;;  %v1008_v25 = vrot.slane %v22_v6, %v79_v22  ;;  %140 = vmatpush1.msra.mxu0 %v1039_v39  ;;  %v1116_v51 = vld [vmem:[%s1344_s2 + $0x8] sm:$0xff]  ;;  %v1124_v52 = vld [vmem:[%s1344_s2] sm:$0xff] }
   0x8   :  { %v1010_v26 = vrot.slane %v21_v5, %v89_v23  ;;  %v1012_v28 = vrot.slane %v22_v6, %v89_v23  ;;  %250 = vmatpush1.msra.mxu1 %v1039_v39  ;;  %141 = vmatprep.subr.mxu0 %v1046_v40  ;;  %v878_v55 = vld [vmem:[%s1342_s0 + $0x2] sm:$0x3] }
   0x9   :  { %251 = vmatprep.subr.mxu1 %v1046_v40  ;;  %142 = vmatpush1.msra.mxu0 %v1053_v41 }
   0xa   :  { %252 = vmatpush1.msra.mxu1 %v1053_v41  ;;  %143 = vmatprep.subr.mxu0 %v1060_v42 }
   0xb   :  { %253 = vmatprep.subr.mxu1 %v1060_v42  ;;  %144 = vmatpush1.msra.mxu0 %v1067_v43 }
   0xc   :  { %254 = vmatpush1.msra.mxu1 %v1067_v43  ;;  %145 = vmatprep.subr.mxu0 %v1074_v44 }
   0xd   :  { %146 = vmatpush1.msra.mxu0 %v1081_v45  ;;  %255 = vmatprep.subr.mxu1 %v1074_v44 }
   0xe   :  { %147 = vmatprep.subr.mxu0 %v1088_v47  ;;  %256 = vmatpush1.msra.mxu1 %v1081_v45 }
   0xf   :  { %148 = vmatpush1.msra.mxu0 %v1096_v48  ;;  %257 = vmatprep.subr.mxu1 %v1088_v47 }
  0x10   :  { %149 = vmatprep.subr.mxu0 %v1102_v49  ;;  %258 = vmatpush1.msra.mxu1 %v1096_v48 }
  0x11   :  { %150 = vmatpush1.msra.mxu0 %v1109_v50  ;;  %259 = vmatprep.subr.mxu1 %v1102_v49 }
  0x12   :  { %151 = vmatprep.subr.mxu0 %v1116_v51  ;;  %260 = vmatpush1.msra.mxu1 %v1109_v50 }
  0x13   :  { %152 = vmatpush1.msra.mxu0 %v1124_v52  ;;  %261 = vmatprep.subr.mxu1 %v1116_v51 }
  0x14   :  { %353 = vmatprep.subr.mxu0 %v1021_v35  ;;  %262 = vmatpush1.msra.mxu1 %v1124_v52 }
  0x15   :  { %459 = vmatprep.subr.mxu1 %v1021_v35 }
  0x7d   :  { %v43_v13 = vpop.permute.xlu0 %42 }
  0x7e   :  { %v53_v16 = vmul.f32 %v988_v8, %v43_v13  ;;  %v54_v17 = vmul.f32 %v990_v9, %v43_v13 }
  0x80   :  { %v63_v18 = vadd.f32 %v992_v11, %v53_v16  ;;  %v64_v19 = vadd.f32 %v994_v12, %v54_v17  ;;  %v880_v17 = vld [vmem:[%s1342_s0 + $0x4] sm:$0x3] }
  0x82   :  { %v73_v20 = vmul.f32 %v996_v14, %v63_v18  ;;  %v74_v21 = vmul.f32 %v998_v15, %v64_v19 }
  0x84   :  { %898 = vtanh.f32 %v73_v20 }
  0x85   :  { %900 = vtanh.f32 %v74_v21 }
  0x91   :  { %v899_v27 = vpop.eup %898 }
  0x92   :  { %v901_v29 = vpop.eup %900  ;;  %v85_v30 = vmul.f32 %v899_v27, %v1006_v24 }
  0x93   :  { %v86_v31 = vmul.f32 %v901_v29, %v1008_v25 }
  0x94   :  { %v95_v32 = vadd.f32 %v1010_v26, %v85_v30 }
  0x95   :  { %v96_v33 = vadd.f32 %v1012_v28, %v86_v31 }
  0x97   :  { %v97_v34 = vmul.f32 %v96_v33, %v95_v32 }
  0x99   :  { %902 = vtanh.f32 %v97_v34 }
  0xa6   :  { %v903_v46 = vpop.eup %902 }
  0xa7   :  { %100 = vrot.lane.b32.xlu0 %v903_v46, %s948_s20 }
  0xab   :  { %203 = vrot.lane.b32.xlu0 %v97_v34, %s948_s20 }
 0x119   :  { %v101_v53 = vpop.permute.xlu0 %100 }
 0x11a   :  { %v103_v54 = vmul.f32 %v101_v53, %v96_v33 }
 0x11c   :  { %116 = vrot.lane.b32.xlu1 %v103_v54, %s948_s20 }
 0x11d   :  { %v204_v18 = vpop.permute.xlu0 %203 }
 0x120   :  { %108 = vperm.xlu1 %897, %v878_v55  }
 0x18e   :  { %v117_v56 = vpop.permute.xlu1 %116 }
 0x18f   :  { %879 = vmatmul.mubr.msk.f32.vlgmr.msra.gmra.mxu0 %vm118_vm0, %v117_v56 }
 0x190   :  { %354 = vmatpush1.msra.mxu0 %v1026_v36  ;;  %401 = vmatprep.mubr.f32.mxu0 %v947_v38 }
 0x191   :  { %355 = vmatprep.subr.mxu0 %v1031_v37 }
 0x192   :  { %356 = vmatpush1.msra.mxu0 %v1039_v39 }
 0x193   :  { %357 = vmatprep.subr.mxu0 %v1046_v40 }
 0x194   :  { %358 = vmatpush1.msra.mxu0 %v1053_v41 }
 0x195   :  { %359 = vmatprep.subr.mxu0 %v1060_v42 }
 0x196   :  { %360 = vmatpush1.msra.mxu0 %v1067_v43 }
 0x197   :  { %361 = vmatprep.subr.mxu0 %v1074_v44 }
 0x198   :  { %362 = vmatpush1.msra.mxu0 %v1081_v45 }
 0x199   :  { %363 = vmatprep.subr.mxu0 %v1088_v47 }
 0x19a   :  { %364 = vmatpush1.msra.mxu0 %v1096_v48 }
 0x19b   :  { %365 = vmatprep.subr.mxu0 %v1102_v49  ;;  %v109_v57 = vpop.permute.xlu1 %108 }
 0x19c   :  { %366 = vmatpush1.msra.mxu0 %v1109_v50  ;;  %v111_v58 = vmul.f32 %v109_v57, %v988_v8  ;;  %v112_v59 = vmul.f32 %v109_v57, %v990_v9 }
 0x19d   :  { %367 = vmatprep.subr.mxu0 %v1116_v51 }
 0x19e   :  { %368 = vmatpush1.msra.mxu0 %v1124_v52  ;;  %v113_v60 = vadd.f32 %v111_v58, %v992_v11  ;;  %v114_v61 = vadd.f32 %v112_v59, %v994_v12 }
 0x19f   :  { %565 = vmatprep.subr.mxu0 %v1021_v35 }
 0x24f   :  { %v187_v62 = vpop.f32.mrf.mxu0 }
 0x250   :  { %v192_v63 = vadd.f32 %v187_v62, %v113_v60 }
 0x251   :  { %v189_v0 = vpop.f32.mrf.mxu0 }
 0x252   :  { %v194_v1 = vmul.f32 %v192_v63, %v996_v14  ;;  %v193_v2 = vadd.f32 %v189_v0, %v114_v61  ;;  %v882_v0 = vld [vmem:[%s1342_s0 + $0x6] sm:$0x3] }
 0x254   :  { %904 = vtanh.f32 %v194_v1  ;;  %v195_v3 = vmul.f32 %v193_v2, %v998_v15 }
 0x256   :  { %906 = vtanh.f32 %v195_v3 }
 0x261   :  { %v905_v4 = vpop.eup %904 }
 0x262   :  { %v198_v5 = vmul.f32 %v905_v4, %v1006_v24 }
 0x263   :  { %v907_v6 = vpop.eup %906 }
 0x264   :  { %v199_v7 = vmul.f32 %v907_v6, %v1008_v25  ;;  %v200_v10 = vadd.f32 %v198_v5, %v1010_v26 }
 0x266   :  { %v201_v13 = vadd.f32 %v199_v7, %v1012_v28  ;;  %v206_v19 = vmul.f32 %v204_v18, %v200_v10 }
 0x268   :  { %v207_v16 = vmul.f32 %v201_v13, %v200_v10 }
 0x26a   :  { %209 = vrot.lane.b32.xlu1 %v207_v16, %s948_s20 }
 0x26e   :  { %219 = vperm.xlu1 %897, %v880_v17  }
 0x2dc   :  { %v210_v20 = vpop.permute.xlu1 %209 }
 0x2dd   :  { %v212_v21 = vadd.f32 %v210_v20, %v206_v19 }
 0x2df   :  { %908 = vtanh.f32 %v212_v21 }
 0x2e9   :  { %v220_v29 = vpop.permute.xlu1 %219 }
 0x2ea   :  { %v222_v30 = vmul.f32 %v220_v29, %v988_v8  ;;  %v223_v31 = vmul.f32 %v220_v29, %v990_v9 }
 0x2ec   :  { %v909_v22 = vpop.eup %908  ;;  %v224_v32 = vadd.f32 %v222_v30, %v992_v11  ;;  %v225_v46 = vadd.f32 %v223_v31, %v994_v12 }
 0x2ed   :  { %v214_v23 = vmul.f32 %v909_v22, %v201_v13 }
 0x2ef   :  { %227 = vrot.lane.b32.xlu0 %v214_v23, %s948_s20 }
 0x361   :  { %v228_v27 = vpop.permute.xlu0 %227 }
 0x362   :  { %881 = vmatmul.mubr.msk.f32.vlgmr.msra.gmra.mxu1 %vm118_vm0, %v228_v27 }
 0x363   :  { %460 = vmatpush1.msra.mxu1 %v1026_v36  ;;  %507 = vmatprep.mubr.f32.mxu1 %v947_v38 }
 0x364   :  { %461 = vmatprep.subr.mxu1 %v1031_v37 }
 0x365   :  { %462 = vmatpush1.msra.mxu1 %v1039_v39 }
 0x366   :  { %463 = vmatprep.subr.mxu1 %v1046_v40 }
 0x367   :  { %464 = vmatpush1.msra.mxu1 %v1053_v41 }
 0x368   :  { %465 = vmatprep.subr.mxu1 %v1060_v42 }
 0x369   :  { %466 = vmatpush1.msra.mxu1 %v1067_v43 }
 0x36a   :  { %467 = vmatprep.subr.mxu1 %v1074_v44 }
 0x36b   :  { %468 = vmatpush1.msra.mxu1 %v1081_v45 }
 0x36c   :  { %469 = vmatprep.subr.mxu1 %v1088_v47 }
 0x36d   :  { %470 = vmatpush1.msra.mxu1 %v1096_v48 }
 0x36e   :  { %471 = vmatprep.subr.mxu1 %v1102_v49 }
 0x36f   :  { %472 = vmatpush1.msra.mxu1 %v1109_v50 }
 0x370   :  { %473 = vmatprep.subr.mxu1 %v1116_v51 }
 0x371   :  { %474 = vmatpush1.msra.mxu1 %v1124_v52 }
 0x372   :  { %671 = vmatprep.subr.mxu1 %v1021_v35 }
 0x422   :  { %v297_v33 = vpop.f32.mrf.mxu1 }
 0x423   :  { %v302_v34 = vadd.f32 %v297_v33, %v224_v32 }
 0x424   :  { %v299_v53 = vpop.f32.mrf.mxu1 }
 0x425   :  { %v304_v54 = vmul.f32 %v302_v34, %v996_v14  ;;  %v303_v55 = vadd.f32 %v299_v53, %v225_v46  ;;  %v884_v34 = vld [vmem:[%s1342_s0 + $0x8] sm:$0x3] }
 0x427   :  { %910 = vtanh.f32 %v304_v54  ;;  %v305_v56 = vmul.f32 %v303_v55, %v998_v15 }
 0x429   :  { %912 = vtanh.f32 %v305_v56 }
 0x434   :  { %v911_v57 = vpop.eup %910 }
 0x435   :  { %v308_v58 = vmul.f32 %v911_v57, %v1006_v24 }
 0x436   :  { %v913_v59 = vpop.eup %912 }
 0x437   :  { %v309_v60 = vmul.f32 %v913_v59, %v1008_v25  ;;  %v310_v61 = vadd.f32 %v308_v58, %v1010_v26 }
 0x439   :  { %v311_v62 = vadd.f32 %v309_v60, %v1012_v28  ;;  %v312_v1 = vmul.f32 %v310_v61, %v212_v21 }
 0x43b   :  { %v313_v63 = vmul.f32 %v311_v62, %v310_v61 }
 0x43d   :  { %315 = vrot.lane.b32.xlu0 %v313_v63, %s948_s20 }
 0x441   :  { %325 = vperm.xlu0 %896, %v882_v0  }
 0x4af   :  { %v316_v2 = vpop.permute.xlu0 %315 }
 0x4b0   :  { %v318_v3 = vadd.f32 %v316_v2, %v312_v1 }
 0x4b2   :  { %914 = vtanh.f32 %v318_v3 }
 0x4bc   :  { %v326_v7 = vpop.permute.xlu0 %325 }
 0x4bd   :  { %v328_v10 = vmul.f32 %v326_v7, %v988_v8  ;;  %v329_v13 = vmul.f32 %v326_v7, %v990_v9 }
 0x4bf   :  { %v915_v4 = vpop.eup %914  ;;  %v330_v16 = vadd.f32 %v328_v10, %v992_v11  ;;  %v331_v19 = vadd.f32 %v329_v13, %v994_v12 }
 0x4c0   :  { %v320_v5 = vmul.f32 %v915_v4, %v311_v62 }
 0x4c2   :  { %333 = vrot.lane.b32.xlu1 %v320_v5, %s948_s20 }
 0x534   :  { %v334_v6 = vpop.permute.xlu1 %333 }
 0x535   :  { %883 = vmatmul.mubr.msk.f32.vlgmr.msra.gmra.mxu0 %vm118_vm0, %v334_v6 }
 0x536   :  { %566 = vmatpush1.msra.mxu0 %v1026_v36  ;;  %613 = vmatprep.mubr.f32.mxu0 %v947_v38 }
 0x537   :  { %567 = vmatprep.subr.mxu0 %v1031_v37 }
 0x538   :  { %568 = vmatpush1.msra.mxu0 %v1039_v39 }
 0x539   :  { %569 = vmatprep.subr.mxu0 %v1046_v40 }
 0x53a   :  { %570 = vmatpush1.msra.mxu0 %v1053_v41 }
 0x53b   :  { %571 = vmatprep.subr.mxu0 %v1060_v42 }
 0x53c   :  { %572 = vmatpush1.msra.mxu0 %v1067_v43 }
 0x53d   :  { %573 = vmatprep.subr.mxu0 %v1074_v44 }
 0x53e   :  { %574 = vmatpush1.msra.mxu0 %v1081_v45 }
 0x53f   :  { %575 = vmatprep.subr.mxu0 %v1088_v47 }
 0x540   :  { %576 = vmatpush1.msra.mxu0 %v1096_v48 }
 0x541   :  { %577 = vmatprep.subr.mxu0 %v1102_v49 }
 0x542   :  { %578 = vmatpush1.msra.mxu0 %v1109_v50 }
 0x543   :  { %579 = vmatprep.subr.mxu0 %v1116_v51 }
 0x544   :  { %580 = vmatpush1.msra.mxu0 %v1124_v52 }
 0x545   :  { %777 = vmatprep.subr.mxu0 %v1021_v35 }
 0x5f5   :  { %v403_v17 = vpop.f32.mrf.mxu0 }
 0x5f6   :  { %v408_v18 = vadd.f32 %v403_v17, %v330_v16 }
 0x5f7   :  { %v405_v20 = vpop.f32.mrf.mxu0 }
 0x5f8   :  { %v410_v21 = vmul.f32 %v408_v18, %v996_v14  ;;  %v409_v22 = vadd.f32 %v405_v20, %v331_v19  ;;  %v886_v18 = vld [vmem:[%s1342_s0 + $0xa] sm:$0x3] }
 0x5fa   :  { %916 = vtanh.f32 %v410_v21  ;;  %v411_v23 = vmul.f32 %v409_v22, %v998_v15 }
 0x5fc   :  { %918 = vtanh.f32 %v411_v23 }
 0x607   :  { %v917_v35 = vpop.eup %916 }
 0x608   :  { %v414_v27 = vmul.f32 %v917_v35, %v1006_v24 }
 0x609   :  { %v919_v29 = vpop.eup %918 }
 0x60a   :  { %v415_v30 = vmul.f32 %v919_v29, %v1008_v25  ;;  %v416_v31 = vadd.f32 %v414_v27, %v1010_v26 }
 0x60c   :  { %v417_v32 = vadd.f32 %v415_v30, %v1012_v28  ;;  %v418_v46 = vmul.f32 %v416_v31, %v318_v3  ;;  %v888_v30 = vld [vmem:[%s1342_s0 + $0xc] sm:$0x3] }
 0x60e   :  { %v419_v33 = vmul.f32 %v417_v32, %v416_v31 }
 0x610   :  { %421 = vrot.lane.b32.xlu1 %v419_v33, %s948_s20 }
 0x614   :  { %431 = vperm.xlu1 %897, %v884_v34  }
 0x682   :  { %v422_v53 = vpop.permute.xlu1 %421 }
 0x683   :  { %v424_v54 = vadd.f32 %v422_v53, %v418_v46 }
 0x685   :  { %920 = vtanh.f32 %v424_v54 }
 0x68f   :  { %v432_v58 = vpop.permute.xlu1 %431 }
 0x690   :  { %v434_v59 = vmul.f32 %v432_v58, %v988_v8  ;;  %v435_v60 = vmul.f32 %v432_v58, %v990_v9 }
 0x692   :  { %v921_v55 = vpop.eup %920  ;;  %v436_v61 = vadd.f32 %v434_v59, %v992_v11  ;;  %v437_v0 = vadd.f32 %v435_v60, %v994_v12 }
 0x693   :  { %v426_v56 = vmul.f32 %v921_v55, %v417_v32 }
 0x695   :  { %439 = vrot.lane.b32.xlu0 %v426_v56, %s948_s20 }
 0x707   :  { %v440_v57 = vpop.permute.xlu0 %439 }
 0x708   :  { %885 = vmatmul.mubr.msk.f32.vlgmr.msra.gmra.mxu1 %vm118_vm0, %v440_v57 }
 0x709   :  { %672 = vmatpush1.msra.mxu1 %v1026_v36  ;;  %719 = vmatprep.mubr.f32.mxu1 %v947_v38 }
 0x70a   :  { %673 = vmatprep.subr.mxu1 %v1031_v37 }
 0x70b   :  { %674 = vmatpush1.msra.mxu1 %v1039_v39 }
 0x70c   :  { %675 = vmatprep.subr.mxu1 %v1046_v40 }
 0x70d   :  { %676 = vmatpush1.msra.mxu1 %v1053_v41 }
 0x70e   :  { %677 = vmatprep.subr.mxu1 %v1060_v42 }
 0x70f   :  { %678 = vmatpush1.msra.mxu1 %v1067_v43 }
 0x710   :  { %679 = vmatprep.subr.mxu1 %v1074_v44 }
 0x711   :  { %680 = vmatpush1.msra.mxu1 %v1081_v45 }
 0x712   :  { %681 = vmatprep.subr.mxu1 %v1088_v47 }
 0x713   :  { %682 = vmatpush1.msra.mxu1 %v1096_v48 }
 0x714   :  { %683 = vmatprep.subr.mxu1 %v1102_v49 }
 0x715   :  { %684 = vmatpush1.msra.mxu1 %v1109_v50 }
 0x716   :  { %685 = vmatprep.subr.mxu1 %v1116_v51 }
 0x717   :  { %686 = vmatpush1.msra.mxu1 %v1124_v52 }
 0x7c8   :  { %v509_v62 = vpop.f32.mrf.mxu1 }
 0x7c9   :  { %v514_v63 = vadd.f32 %v509_v62, %v436_v61 }
 0x7ca   :  { %v511_v1 = vpop.f32.mrf.mxu1 }
 0x7cb   :  { %v516_v2 = vmul.f32 %v514_v63, %v996_v14  ;;  %v515_v3 = vadd.f32 %v511_v1, %v437_v0 }
 0x7cd   :  { %922 = vtanh.f32 %v516_v2  ;;  %v517_v4 = vmul.f32 %v515_v3, %v998_v15 }
 0x7cf   :  { %924 = vtanh.f32 %v517_v4 }
 0x7da   :  { %v923_v5 = vpop.eup %922 }
 0x7db   :  { %v520_v6 = vmul.f32 %v923_v5, %v1006_v24 }
 0x7dc   :  { %v925_v7 = vpop.eup %924 }
 0x7dd   :  { %v521_v10 = vmul.f32 %v925_v7, %v1008_v25  ;;  %v522_v13 = vadd.f32 %v520_v6, %v1010_v26 }
 0x7df   :  { %v523_v16 = vadd.f32 %v521_v10, %v1012_v28  ;;  %v524_v19 = vmul.f32 %v522_v13, %v424_v54  ;;  %v890_v10 = vld [vmem:[%s1342_s0 + $0xe] sm:$0x3] }
 0x7e1   :  { %v525_v17 = vmul.f32 %v523_v16, %v522_v13 }
 0x7e3   :  { %527 = vrot.lane.b32.xlu0 %v525_v17, %s948_s20 }
 0x7e7   :  { %537 = vperm.xlu0 %896, %v886_v18  }
 0x855   :  { %v528_v20 = vpop.permute.xlu0 %527 }
 0x856   :  { %v530_v21 = vadd.f32 %v528_v20, %v524_v19 }
 0x858   :  { %926 = vtanh.f32 %v530_v21 }
 0x865   :  { %v927_v22 = vpop.eup %926 }
 0x866   :  { %v532_v23 = vmul.f32 %v927_v22, %v523_v16 }
 0x868   :  { %545 = vrot.lane.b32.xlu1 %v532_v23, %s948_s20 }
 0x8da   :  { %v546_v35 = vpop.permute.xlu1 %545 }
 0x8db   :  { %887 = vmatmul.mubr.msk.f32.vlgmr.msra.gmra.mxu0 %vm118_vm0, %v546_v35 }
 0x8dc   :  { %778 = vmatpush1.msra.mxu0 %v1026_v36  ;;  %825 = vmatprep.mubr.f32.mxu0 %v947_v38  ;;  %v538_v36 = vpop.permute.xlu0 %537 }
 0x8dd   :  { %779 = vmatprep.subr.mxu0 %v1031_v37  ;;  %v540_v37 = vmul.f32 %v538_v36, %v988_v8  ;;  %v541_v38 = vmul.f32 %v538_v36, %v990_v9 }
 0x8de   :  { %780 = vmatpush1.msra.mxu0 %v1039_v39 }
 0x8df   :  { %781 = vmatprep.subr.mxu0 %v1046_v40  ;;  %v542_v39 = vadd.f32 %v540_v37, %v992_v11 }
 0x8e0   :  { %782 = vmatpush1.msra.mxu0 %v1053_v41 }
 0x8e1   :  { %783 = vmatprep.subr.mxu0 %v1060_v42  ;;  %v543_v42 = vadd.f32 %v541_v38, %v994_v12 }
 0x8e2   :  { %784 = vmatpush1.msra.mxu0 %v1067_v43 }
 0x8e3   :  { %785 = vmatprep.subr.mxu0 %v1074_v44 }
 0x8e4   :  { %786 = vmatpush1.msra.mxu0 %v1081_v45 }
 0x8e5   :  { %787 = vmatprep.subr.mxu0 %v1088_v47 }
 0x8e6   :  { %788 = vmatpush1.msra.mxu0 %v1096_v48 }
 0x8e7   :  { %789 = vmatprep.subr.mxu0 %v1102_v49 }
 0x8e8   :  { %790 = vmatpush1.msra.mxu0 %v1109_v50 }
 0x8e9   :  { %791 = vmatprep.subr.mxu0 %v1116_v51 }
 0x8ea   :  { %792 = vmatpush1.msra.mxu0 %v1124_v52 }
 0x99b   :  { %v615_v40 = vpop.f32.mrf.mxu0 }
 0x99c   :  { %v620_v41 = vadd.f32 %v615_v40, %v542_v39 }
 0x99d   :  { %v617_v43 = vpop.f32.mrf.mxu0 }
 0x99e   :  { %v622_v44 = vmul.f32 %v620_v41, %v996_v14  ;;  %v621_v45 = vadd.f32 %v617_v43, %v543_v42 }
 0x9a0   :  { %928 = vtanh.f32 %v622_v44  ;;  %v623_v47 = vmul.f32 %v621_v45, %v998_v15 }
 0x9a2   :  { %930 = vtanh.f32 %v623_v47 }
 0x9ad   :  { %v929_v48 = vpop.eup %928 }
 0x9ae   :  { %v626_v49 = vmul.f32 %v929_v48, %v1006_v24 }
 0x9af   :  { %v931_v50 = vpop.eup %930 }
 0x9b0   :  { %v627_v51 = vmul.f32 %v931_v50, %v1008_v25  ;;  %v628_v52 = vadd.f32 %v626_v49, %v1010_v26 }
 0x9b2   :  { %v629_v27 = vadd.f32 %v627_v51, %v1012_v28  ;;  %v630_v31 = vmul.f32 %v628_v52, %v530_v21  ;;  %v892_v21 = vld [vmem:[%s1345_s3] ss:$0 sm:$0xff] }
 0x9b4   :  { %v631_v29 = vmul.f32 %v629_v27, %v628_v52 }
 0x9b6   :  { %633 = vrot.lane.b32.xlu1 %v631_v29, %s948_s20 }
 0x9ba   :  { %643 = vperm.xlu1 %897, %v888_v30  }
 0xa28   :  { %v634_v32 = vpop.permute.xlu1 %633 }
 0xa29   :  { %v636_v33 = vadd.f32 %v634_v32, %v630_v31 }
 0xa2b   :  { %932 = vtanh.f32 %v636_v33 }
 0xa35   :  { %v644_v54 = vpop.permute.xlu1 %643 }
 0xa36   :  { %v646_v55 = vmul.f32 %v644_v54, %v988_v8  ;;  %v647_v56 = vmul.f32 %v644_v54, %v990_v9 }
 0xa38   :  { %v933_v34 = vpop.eup %932  ;;  %v648_v57 = vadd.f32 %v646_v55, %v992_v11  ;;  %v649_v60 = vadd.f32 %v647_v56, %v994_v12 }
 0xa39   :  { %v638_v46 = vmul.f32 %v933_v34, %v629_v27 }
 0xa3b   :  { %651 = vrot.lane.b32.xlu0 %v638_v46, %s948_s20 }
 0xaad   :  { %v652_v53 = vpop.permute.xlu0 %651 }
 0xaae   :  { %889 = vmatmul.mubr.msk.f32.vlgmr.msra.gmra.mxu1 %vm118_vm0, %v652_v53 }
 0xb6e   :  { %v721_v58 = vpop.f32.mrf.mxu1 }
 0xb6f   :  { %v726_v59 = vadd.f32 %v721_v58, %v648_v57 }
 0xb70   :  { %v723_v61 = vpop.f32.mrf.mxu1 }
 0xb71   :  { %v728_v62 = vmul.f32 %v726_v59, %v996_v14  ;;  %v727_v63 = vadd.f32 %v723_v61, %v649_v60 }
 0xb73   :  { %934 = vtanh.f32 %v728_v62  ;;  %v729_v0 = vmul.f32 %v727_v63, %v998_v15 }
 0xb75   :  { %936 = vtanh.f32 %v729_v0 }
 0xb80   :  { %v935_v1 = vpop.eup %934 }
 0xb81   :  { %v732_v2 = vmul.f32 %v935_v1, %v1006_v24 }
 0xb82   :  { %v937_v3 = vpop.eup %936 }
 0xb83   :  { %v733_v4 = vmul.f32 %v937_v3, %v1008_v25  ;;  %v734_v5 = vadd.f32 %v732_v2, %v1010_v26 }
 0xb85   :  { %v735_v6 = vadd.f32 %v733_v4, %v1012_v28  ;;  %v736_v13 = vmul.f32 %v734_v5, %v636_v33 }
 0xb87   :  { %v737_v7 = vmul.f32 %v735_v6, %v734_v5 }
 0xb89   :  { %739 = vrot.lane.b32.xlu0 %v737_v7, %s948_s20 }
 0xb8d   :  { %749 = vperm.xlu0 %896, %v890_v10  }
 0xb91   :  { %857 = vrot.lane.b32.xlu0 %v892_v21, %s948_s20 }
 0xbfb   :  { %v740_v16 = vpop.permute.xlu0 %739 }
 0xbfc   :  { %v742_v17 = vadd.f32 %v740_v16, %v736_v13 }
 0xbfe   :  { %938 = vtanh.f32 %v742_v17 }
 0xc08   :  { %v750_v22 = vpop.permute.xlu0 %749 }
 0xc09   :  { %v752_v23 = vmul.f32 %v750_v22, %v988_v8  ;;  %v753_v35 = vmul.f32 %v750_v22, %v990_v9 }
 0xc0b   :  { %v939_v18 = vpop.eup %938  ;;  %v754_v36 = vadd.f32 %v752_v23, %v992_v11  ;;  %v755_v39 = vadd.f32 %v753_v35, %v994_v12 }
 0xc0c   :  { %v744_v19 = vmul.f32 %v939_v18, %v735_v6 }
 0xc0e   :  { %757 = vrot.lane.b32.xlu1 %v744_v19, %s948_s20 }
 0xc80   :  { %v758_v20 = vpop.permute.xlu1 %757 }
 0xc81   :  { %891 = vmatmul.mubr.msk.f32.vlgmr.msra.gmra.mxu0 %vm118_vm0, %v758_v20 }
 0xd41   :  { %v827_v37 = vpop.f32.mrf.mxu0 }
 0xd42   :  { %v832_v38 = vadd.f32 %v827_v37, %v754_v36 }
 0xd43   :  { %v829_v40 = vpop.f32.mrf.mxu0 }
 0xd44   :  { %v834_v41 = vmul.f32 %v832_v38, %v996_v14  ;;  %v833_v42 = vadd.f32 %v829_v40, %v755_v39 }
 0xd46   :  { %940 = vtanh.f32 %v834_v41  ;;  %v835_v43 = vmul.f32 %v833_v42, %v998_v15  ;;  %v858_v15 = vpop.permute.xlu0 %857 }
 0xd48   :  { %942 = vtanh.f32 %v835_v43 }
 0xd53   :  { %v941_v44 = vpop.eup %940 }
 0xd54   :  { %v838_v45 = vmul.f32 %v941_v44, %v1006_v24 }
 0xd55   :  { %v943_v8 = vpop.eup %942 }
 0xd56   :  { %v839_v9 = vmul.f32 %v943_v8, %v1008_v25  ;;  %v840_v11 = vadd.f32 %v838_v45, %v1010_v26  ;;  %v870_v26 = vstv %s1346_s4 }
 0xd58   :  { %v841_v47 = vadd.f32 %v839_v9, %v1012_v28  ;;  %v842_v12 = vmul.f32 %v840_v11, %v742_v17 }
 0xd5a   :  { %v843_v48 = vmul.f32 %v841_v47, %v840_v11 }
 0xd5c   :  { %845 = vrot.lane.b32.xlu1 %v843_v48, %s948_s20 }
 0xdce   :  { %v846_v14 = vpop.permute.xlu1 %845 }
 0xdcf   :  { %v848_v49 = vadd.f32 %v846_v14, %v842_v12 }
 0xdd1   :  { %944 = vtanh.f32 %v848_v49 }
 0xdde   :  { %v945_v50 = vpop.eup %944 }
 0xddf   :  { %v850_v51 = vmul.f32 %v945_v50, %v841_v47 }
 0xde1   :  { %v860_v52 = vmul.f32 %v858_v15, %v850_v51 }
 0xde3   :  { %862 = vrot.lane.b32.xlu1 %v860_v52, %s948_s20 }
 0xe55   :  { %v863_v24 = vpop.permute.xlu1 %862 }
 0xe56   :  { %v866_v25 = vsel %vm865_vm1, %v863_v24, 0.0 }
 0xe57   :  { %867 = vadd.xlane.f32.xlu0 %v866_v25 }
 0xee0   :  { %v868_v28 = vpop.xlane.xlu0 %867 }
 0xee1   :  { %v871_v27 = vadd.f32 %v870_v26, %v868_v28 }
 0xee3   :  { %873 = vst.msk [vmem:[%s1347_s5] sm:$0x3] %vm872_vm2, %v871_v27 }

</bundles_post_ra>
